<compile_context>
chip_gen: v6e
topology: v6e:2x2x1
jax: 0.10.0
libtpu: 0.0.40
codegen_flags: <defaults>
</compile_context>

<pallas_src>
import functools

import jax
import jax.numpy as jnp
from jax.experimental import pallas as pl
from jax.experimental.pallas import tpu as pltpu


def _round_up(x, m):
    return (x + m - 1) // m * m


def _mlp_kernel(*refs, num_layers):
    # refs = (x_ref, w0_ref, ..., w{L-1}_ref, o_ref)
    x_ref = refs[0]
    w_refs = refs[1:1 + num_layers]
    o_ref = refs[1 + num_layers]

    # x block: (1, C_in, tile_L) -> (C_in, tile_L). Lanes = tile_L (128-mult).
    h = x_ref[0].astype(jnp.float32)
    for i, w_ref in enumerate(w_refs):
        # (C_out_i, C_in_i) @ (C_in_i, tile_L) -> (C_out_i, tile_L), f32 MXU acc.
        h = jnp.dot(w_ref[...].astype(jnp.float32), h,
                    preferred_element_type=jnp.float32)
        if i < num_layers - 1:          # ReLU on all but the last layer
            h = jnp.maximum(h, 0.0)
    o_ref[0] = h.astype(o_ref.dtype)


def mlp_pallas(x_ncl, weights, *, tile_l=512, compute_dtype=None):
    """x_ncl: (N, C_in, L). weights: list of (C_out_i, C_in_i) matrices
    (native PyTorch Conv1d weight layout with the trailing k=1 dim dropped)."""
    n, c_in, length = x_ncl.shape
    num_layers = len(weights)
    c_out = int(weights[-1].shape[0])
    out_dtype = x_ncl.dtype

    if compute_dtype is not None:       # e.g. jnp.bfloat16 on v6e/v7x
        x_ncl = x_ncl.astype(compute_dtype)
        weights = [w.astype(compute_dtype) for w in weights]

    # Lane-dense tiling of the L axis: tile_l is a multiple of 128, and L is
    # zero-padded to a multiple of tile_l (zeros are exact through bias-free
    # conv + ReLU, and the padded columns are sliced off below anyway).
    tile_l = _round_up(max(int(tile_l), 128), 128)
    tile_l = min(tile_l, _round_up(length, 128))
    l_pad = _round_up(length, tile_l)
    if l_pad != length:
        x_ncl = jnp.pad(x_ncl, ((0, 0), (0, 0), (0, l_pad - length)))

    grid = (n, l_pad // tile_l)

    # Input: one batch row, all channels, one lane tile per grid step.
    in_specs = [pl.BlockSpec((1, c_in, tile_l), lambda b, l: (b, 0, l))]
    for w in weights:
        # Each weight matrix is tiny; keep the full matrix resident every step
        # (constant block index -> no re-DMA across the grid).
        in_specs.append(
            pl.BlockSpec((int(w.shape[0]), int(w.shape[1])), lambda b, l: (0, 0)))
    out_spec = pl.BlockSpec((1, c_out, tile_l), lambda b, l: (b, 0, l))

    kernel = functools.partial(_mlp_kernel, num_layers=num_layers)

    itemsize = jnp.dtype(x_ncl.dtype).itemsize
    flops = 2 * n * l_pad * sum(int(w.shape[0]) * int(w.shape[1]) for w in weights)
    bytes_accessed = (
        n * c_in * l_pad * itemsize
        + sum(int(w.size) * jnp.dtype(w.dtype).itemsize for w in weights)
        + n * c_out * l_pad * jnp.dtype(out_dtype).itemsize
    )

    out = pl.pallas_call(
        kernel,
        out_shape=jax.ShapeDtypeStruct((n, c_out, l_pad), out_dtype),
        grid_spec=pltpu.PrefetchScalarGridSpec(
            num_scalar_prefetch=0,
            grid=grid,
            in_specs=in_specs,
            out_specs=out_spec,
        ),
        compiler_params=pltpu.CompilerParams(
            dimension_semantics=("parallel", "parallel"),
        ),
        cost_estimate=pl.CostEstimate(
            flops=int(flops), transcendentals=0,
            bytes_accessed=int(bytes_accessed)),
    )(x_ncl, *weights)

    if l_pad != length:
        out = out[:, :, :length]
    return out


def mlp_reference(x_ncl, weights):
    """Pure-JAX reference matching the PyTorch forward (Conv1d k=1, no bias)."""
    h = x_ncl
    for i, w in enumerate(weights):
        h = jnp.einsum('oc,ncl->nol', w, h)
        if i < len(weights) - 1:
            h = jnp.maximum(h, 0.0)
    return h


def init_weights(key, input_dim, hidden_dim, output_dim, num_layers):
    """Deterministic init mimicking nn.Conv1d default (kaiming-uniform-ish).
    Conv1d weight shape is (C_out, C_in, 1); we keep the (C_out, C_in) slice."""
    h = [hidden_dim] * (num_layers - 1)
    dims_in = [input_dim] + h
    dims_out = h + [output_dim]
    weights = []
    for c_in, c_out in zip(dims_in, dims_out):
        key, sub = jax.random.split(key)
        bound = 1.0 / jnp.sqrt(c_in)
        w_conv = jax.random.uniform(
            sub, (c_out, c_in, 1), jnp.float32, minval=-bound, maxval=bound
        )
        weights.append(w_conv[:, :, 0])  # (C_out, C_in)
    return weights


if __name__ == "__main__":
    # Small shapes consistent with the module: Conv1d input is (N, C_in, L).
    # L = 500 exercises the pad-to-tile path; grid = (2, 1) keeps >= 2 parallel
    # steps for dual-TC chips.
    batch, input_dim, length = 2, 16, 500
    hidden_dim, output_dim, num_layers = 32, 8, 3

    key = jax.random.PRNGKey(0)
    key, kx = jax.random.split(key)
    x = jax.random.normal(kx, (batch, input_dim, length), jnp.float32)

    weights = init_weights(key, input_dim, hidden_dim, output_dim, num_layers)

    out = mlp_pallas(x, weights)
    out = jax.block_until_ready(out)

    ref = mlp_reference(x, weights)
    assert out.shape == (batch, output_dim, length)
    assert jnp.allclose(out, ref, atol=1e-5, rtol=1e-5)

    print("KERNEL_OK")
</pallas_src>

<mosaic_0001>
module attributes {stable_mosaic.version = 11 : i64} {
  func.func @_mlp_kernel(%arg0: i32, %arg1: i32, %arg2: memref<1x16x512xf32, #tpu.memory_space<vmem>>, %arg3: memref<32x16xf32, #tpu.memory_space<vmem>>, %arg4: memref<32x32xf32, #tpu.memory_space<vmem>>, %arg5: memref<8x32xf32, #tpu.memory_space<vmem>>, %arg6: memref<1x8x512xf32, #tpu.memory_space<vmem>>) attributes {dimension_semantics = [#tpu.dimension_semantics<parallel>, #tpu.dimension_semantics<parallel>], iteration_bounds = array<i64: 2, 1>, scalar_prefetch = 0 : i64, scratch_operands = 0 : i64, tpu.core_type = #tpu.core_type<tc>, window_params = [{transform_indices = @transform_0, window_bounds = array<i64: 1, 16, 512>}, {pipeline_mode = #tpu.pipeline_mode<synchronous>, transform_indices = @transform_1, window_bounds = array<i64: 32, 16>}, {pipeline_mode = #tpu.pipeline_mode<synchronous>, transform_indices = @transform_2, window_bounds = array<i64: 32, 32>}, {pipeline_mode = #tpu.pipeline_mode<synchronous>, transform_indices = @transform_3, window_bounds = array<i64: 8, 32>}, {transform_indices = @transform_4, window_bounds = array<i64: 1, 8, 512>}]} {
    %c0 = arith.constant 0 : index
    %c0_0 = arith.constant 0 : index
    %c0_1 = arith.constant 0 : index
    %0 = vector.load %arg2[%c0, %c0_0, %c0_1] : memref<1x16x512xf32, #tpu.memory_space<vmem>>, vector<1x16x512xf32>
    %1 = vector.shape_cast %0 : vector<1x16x512xf32> to vector<16x512xf32>
    %c0_2 = arith.constant 0 : index
    %c0_3 = arith.constant 0 : index
    %2 = vector.load %arg3[%c0_2, %c0_3] : memref<32x16xf32, #tpu.memory_space<vmem>>, vector<32x16xf32>
    %cst = arith.constant dense<0.000000e+00> : vector<32x512xf32>
    %3 = tpu.matmul %2, %1, %cst {dimension_numbers = #tpu.dot_dimension_numbers<[1], [0], [0], [1], [0, 0, 1, 1], [], []>} : vector<32x16xf32>, vector<16x512xf32>, vector<32x512xf32> -> vector<32x512xf32>
    %cst_4 = arith.constant 0.000000e+00 : f32
    %4 = vector.broadcast %cst_4 : f32 to vector<32x512xf32>
    %5 = arith.maximumf %3, %4 : vector<32x512xf32>
    %c0_5 = arith.constant 0 : index
    %c0_6 = arith.constant 0 : index
    %6 = vector.load %arg4[%c0_5, %c0_6] : memref<32x32xf32, #tpu.memory_space<vmem>>, vector<32x32xf32>
    %cst_7 = arith.constant dense<0.000000e+00> : vector<32x512xf32>
    %7 = tpu.matmul %6, %5, %cst_7 {dimension_numbers = #tpu.dot_dimension_numbers<[1], [0], [0], [1], [0, 0, 1, 1], [], []>} : vector<32x32xf32>, vector<32x512xf32>, vector<32x512xf32> -> vector<32x512xf32>
    %cst_8 = arith.constant 0.000000e+00 : f32
    %8 = vector.broadcast %cst_8 : f32 to vector<32x512xf32>
    %9 = arith.maximumf %7, %8 : vector<32x512xf32>
    %c0_9 = arith.constant 0 : index
    %c0_10 = arith.constant 0 : index
    %10 = vector.load %arg5[%c0_9, %c0_10] : memref<8x32xf32, #tpu.memory_space<vmem>>, vector<8x32xf32>
    %cst_11 = arith.constant dense<0.000000e+00> : vector<8x512xf32>
    %11 = tpu.matmul %10, %9, %cst_11 {dimension_numbers = #tpu.dot_dimension_numbers<[1], [0], [0], [1], [0, 0, 1, 1], [], []>} : vector<8x32xf32>, vector<32x512xf32>, vector<8x512xf32> -> vector<8x512xf32>
    %c0_12 = arith.constant 0 : index
    %c0_13 = arith.constant 0 : index
    %c0_14 = arith.constant 0 : index
    %12 = vector.load %arg6[%c0_12, %c0_13, %c0_14] : memref<1x8x512xf32, #tpu.memory_space<vmem>>, vector<1x8x512xf32>
    %13 = vector.shape_cast %12 : vector<1x8x512xf32> to vector<8x512xf32>
    %14 = vector.shape_cast %11 : vector<8x512xf32> to vector<1x8x512xf32>
    tpu.vector_store %arg6[%c0_12, %c0_13, %c0_14], %14 {strides = array<i32>} : memref<1x8x512xf32, #tpu.memory_space<vmem>>, vector<1x8x512xf32>,
    return
  }
  func.func @transform_0(%arg0: i32, %arg1: i32) -> (i32, i32, i32) {
    %c0_i32 = arith.constant 0 : i32
    %c0_i32_0 = arith.constant 0 : i32
    return %arg0, %c0_i32, %arg1 : i32, i32, i32
  }
  func.func @transform_1(%arg0: i32, %arg1: i32) -> (i32, i32) {
    %c0_i32 = arith.constant 0 : i32
    %c0_i32_0 = arith.constant 0 : i32
    %c0_i32_1 = arith.constant 0 : i32
    return %c0_i32, %c0_i32_0 : i32, i32
  }
  func.func @transform_2(%arg0: i32, %arg1: i32) -> (i32, i32) {
    %c0_i32 = arith.constant 0 : i32
    %c0_i32_0 = arith.constant 0 : i32
    %c0_i32_1 = arith.constant 0 : i32
    return %c0_i32, %c0_i32_0 : i32, i32
  }
  func.func @transform_3(%arg0: i32, %arg1: i32) -> (i32, i32) {
    %c0_i32 = arith.constant 0 : i32
    %c0_i32_0 = arith.constant 0 : i32
    %c0_i32_1 = arith.constant 0 : i32
    return %c0_i32, %c0_i32_0 : i32, i32
  }
  func.func @transform_4(%arg0: i32, %arg1: i32) -> (i32, i32, i32) {
    %c0_i32 = arith.constant 0 : i32
    %c0_i32_0 = arith.constant 0 : i32
    return %arg0, %c0_i32, %arg1 : i32, i32, i32
  }
}

</mosaic_0001>

<bundles_post_ra>
// kernel: tpu_custom_call.1
= control target key start
LH: loop header
LB: loop body
LE: loop exit
PB: predicated region body
PF: predicated region fallthrough
CT: control target
= control target key end

     0   :  { %9 = vsyncpa [#allocation3], 0  ;;  %s1365_s0 = inlined_call_operand.hbm [shape: f32[2,16,512], index: 0, kind: input, shape index: {}]   ;;  %s1366_s1 = inlined_call_operand.vmem [shape: f32[32,16], index: 1, kind: input, shape index: {}]   ;;  %s1367_s2 = inlined_call_operand.vmem [shape: f32[32,32], index: 2, kind: input, shape index: {}]   ;;  %s1368_s3 = inlined_call_operand.vmem [shape: f32[8,32], index: 3, kind: input, shape index: {}]   ;;  %s1369_s4 = inlined_call_operand.hbm [shape: f32[2,8,512], index: 4, kind: output, shape index: {}]  }
   0x1   :  { %11 = vsyncpa [#allocation3 + $0x1], 0 }
   0x2   :  { %12 = vsyncpa [#allocation4], 0 }
   0x3   :  { %14 = vsyncpa [#allocation4 + $0x1], 0  ;;  %s1157_s15 = smov 0   ;;  %s1159_s16 = smov 0  }
   0x4   :  { %s1161_s17 = smov 0   ;;  %s1163_s18 = smov 0  }
   0x5   :  { %s1165_s19 = smov 0   ;;  %s1167_s20 = smov 0  }
   0x6 LB: > { %s917_s21 = sadd.s32 4294967295, %s1125_s20   ;;  %s918_s22 = sadd.s32 4294967294, %s1125_s20   ;;  %s1125_s20 = sphi %s1167_s20, %s20_s20   ;;  %s1121_s19 = sphi %s1165_s19, %s1380_s19   ;;  %s1117_s18 = sphi %s1163_s18, %s1379_s18   ;;  %s1113_s17 = sphi %s1161_s17, %s1378_s17   ;;  %s1109_s16 = sphi %s1159_s16, %s1377_s16   ;;  %s1105_s15 = sphi %s1157_s15, %s1376_s15  }
   0x7   : > { %s32_s23 = sadd.s32 1, %s1121_s19  ;;  %s41_s24 = sadd.s32 1, %s1113_s17 }
   0x8   : > { %p34_p0 = scmp.ge.s32.totalorder %s32_s23, 2  ;;  %p48_p1 = scmp.ne.s32.totalorder %s1113_s17, %s1109_s16 }
   0x9   : > { %p49_p2 = scmp.eq.s32.totalorder %s1125_s20, 0  ;;  %p54_p3 = scmp.ne.s32.totalorder %s1109_s16, %s1105_s15 }
   0xa   : > { %s1382_s23 = smov (%p34_p0, %s32_s23), 0  ;;  %p55_p5 = scmp.eq.s32.totalorder %s917_s21, 0 }
   0xb   : > { %p1198_p4 = por %p49_p2, %p48_p1  ;;  %s36_s26 = ssub.s32 %s1121_s19, %s1382_s23 }
   0xc   : > { %p143_p6 = scmp.eq.s32.totalorder %s917_s21, 1  ;;  %p39_p7 = scmp.eq.s32.totalorder %s36_s26, 0 }
   0xd   : > { %p1204_p8 = por %p55_p5, %p54_p3  ;;  %p149_p10 = scmp.eq.s32.totalorder %s918_s22, 1 }
   0xe   : > { %p1208_p9 = por %p143_p6, %p48_p1  ;;  %p964_p13 = scmp.lt.s32.totalorder %s1125_s20, 2 }
   0xf   : > { %s1213_s29 = scalar_select %p39_p7, %s1113_s17, %s41_s24  }
  0x10   : > { %p1215_p11 = por %p149_p10, %p54_p3  ;;  %s178_s5 = sand.u32 1, %s1113_s17  }
  0x11   : > { %s921_s6 = sshll.u32 %s178_s5, 6  ;;  %s950_s7 = sshll.u32 %s1121_s19, 10 }
  0x12   : > { %s190_s10 = scalar_lea.hbm %s1365_s0, %s950_s7  ;;  %s182_s11 = scalar_lea.vmem [#allocation2], %s921_s6 }
  0x13   : > { %s191_s12 = sshll.u32 %s182_s11, 4  ;;  %p1228_p0 = pnand %p964_p13, %p1198_p4  ;;  %s192_s12 = int_to_ptr.vmem [resolvable:$true] %s191_s12 }
  0x14   : > { %p924_p1 = scmp.ge.s32.totalorder %s1125_s20, 1  ;;  %s179_s14 = scalar_lea.sflag [#allocation3], %s178_s5 }
  0x15   : > { %p1019_p2 = pneg %p1228_p0  ;;  %s1030_s21 = scalar_lea.vmem %s192_s12, 1024 }
  0x16   : > { %p1031_p3 = scmp.ne.s32.totalorder %s192_s12, %s1030_s21  ;;  %s1127_s22 = smov [#allocation2]  }
  0x17   : > { %s1035_s24 = sshll.u32 %s1127_s22, 4  ;;  %s1036_s24 = int_to_ptr.vmem [resolvable:$false] %s1035_s24 }
  0x18   : > { %p1033_p5 = pnand %p1031_p3, %p1019_p2  ;;  %s1037_s26 = scalar_lea.vmem %s1036_s24, 2048 }
  0x19   : > { %p1038_p7 = scmp.lt.s32.totalorder %s192_s12, %s1036_s24  ;;  %p1039_p10 = scmp.lt.s32.totalorder %s1037_s26, %s1030_s21 }
  0x1a   : > { %p1034_p6 = pneg %p1033_p5 }
  0x1b   : > { %p1040_p12 = por %p1039_p10, %p1038_p7 }
  0x1d   : > { %p1041_p4 = pnand %p1040_p12, %p1034_p6 }
  0x1f   : > { %1044 = shalt.err (!%p1041_p4)
}
  0x20   : > { %s1128_s25 = smov 512   ;;  %s1129_s5 = smov 32  }
  0x21   : > { %959 = dma.hbm_to_vmem [thread:$0]  (!%p1228_p0), %s190_s10, 1024, %s192_s12, %s179_s14, %s1128_s25, %s1128_s25, %s1129_s5  }
  0x22   : > { %p199_p13 = scmp.lt.s32.totalorder %s1125_s20, 3 }
  0x24   : > { %p200_p2 = pnand %p924_p1, %p199_p13 }
  0x25   : > { %s1241_s6 = sand.u32 (!%p200_p2), 1, %s1109_s16  }
  0x26   : > { %203 = sbr.rel (%p200_p2) target bundleno = 692 (0x2b4), region = 36  ;;  %s925_s7 = sshll.u32 (!%p200_p2), %s1241_s6, 6 }
  0x27   : > { %s206_s8 = scalar_lea.sflag (!%p200_p2), [#allocation3], %s1241_s6  ;;  %s209_s9 = scalar_lea.vmem (!%p200_p2), [#allocation2], %s925_s7 }
  0x2b   : > { %1096 = dma.done.wait (%p1204_p8), %s206_s8, 1024  }
  0x2c   : > { %1098 = vsyncadd (%p1204_p8), %s206_s8, 4294966272  ;;  %v1130_v0 = vmov 0.0   ;;  %v241_v1 = vld [vmem:[%s209_s9 + $0x28] sm:$0xff]  ;;  %v243_v2 = vld [vmem:[%s209_s9 + $0x38] sm:$0xff]  ;;  %vm248_vm0 = vcmask 130048   ;;  %vm459_vm1 = vcmask 261120  }
  0x2d   : > { %325 = vmatprep.mubr.f32.mxu0 %v1130_v0  ;;  %414 = vmatprep.mubr.f32.mxu1 %v1130_v0  ;;  %v240_v3 = vld [vmem:[%s209_s9 + $0x20] sm:$0xff]  ;;  %v242_v4 = vld [vmem:[%s209_s9 + $0x30] sm:$0xff]  ;;  %v237_v5 = vld [vmem:[%s209_s9 + $0x8] sm:$0xff]  ;;  %s926_s12 = sshll.u32 %s1241_s6, 5  ;;  %s951_s21 = sshll.u32 %s1117_s18, 9 }
  0x2e   : > { %289 = vmatprep.subr.mxu0 %v241_v1  ;;  %378 = vmatprep.subr.mxu1 %v243_v2  ;;  %v239_v6 = vld [vmem:[%s209_s9 + $0x18] sm:$0xff]  ;;  %v236_v7 = vld [vmem:[%s209_s9] sm:$0xff]  ;;  %v238_v8 = vld [vmem:[%s209_s9 + $0x10] sm:$0xff]  ;;  %s233_s13 = scalar_lea.vmem [#allocation5], %s926_s12  ;;  %s1319_s26 = scalar_lea.hbm %s1369_s4, %s951_s21 }
  0x2f   : > { %290 = vmatpush1.msra.mxu0 %v240_v3  ;;  %379 = vmatpush1.msra.mxu1 %v242_v4  ;;  %v244_v9 = vld [vmem:[%s1366_s1] sm:$0xff]  ;;  %v245_v10 = vld [vmem:[%s1366_s1 + $0x8] sm:$0xff]  ;;  %v246_v11 = vld [vmem:[%s1366_s1 + $0x10] sm:$0xff]  ;;  %s833_s14 = sshll.u32 %s233_s13, 4  ;;  %s817_s25 = scalar_lea.sflag [#allocation4], %s1241_s6  ;;  %s1314_s14 = int_to_ptr.vmem [resolvable:$true] %s833_s14 }
  0x30   : > { %291 = vmatprep.subr.mxu0 %v237_v5  ;;  %380 = vmatprep.subr.mxu1 %v239_v6  ;;  %v247_v12 = vld [vmem:[%s1366_s1 + $0x18] sm:$0xff]  ;;  %v455_v45 = vld [vmem:[%s1367_s2] sm:$0xff]  ;;  %v456_v46 = vld [vmem:[%s1367_s2 + $0x8] sm:$0xff]  ;;  %s1045_s18 = scalar_lea.vmem %s1314_s14, 512  ;;  %s1131_s5 = smov [#allocation5]  }
  0x31   : > { %292 = vmatpush1.msra.mxu0 %v236_v7  ;;  %381 = vmatpush1.msra.mxu1 %v238_v8  ;;  %v457_v47 = vld [vmem:[%s1367_s2 + $0x10] sm:$0xff]  ;;  %v458_v48 = vld [vmem:[%s1367_s2 + $0x18] sm:$0xff]  ;;  %p1046_p8 = scmp.ne.s32.totalorder %s1314_s14, %s1045_s18  ;;  %s1049_s7 = sshll.u32 %s1131_s5, 4  ;;  %s1050_s7 = int_to_ptr.vmem [resolvable:$false] %s1049_s7 }
  0x32   : > { %927 = vmatmul.mubr.msk.f32.vlgmr.msra.gmra.mxu0 %vm248_vm0, %v244_v9  ;;  %931 = vmatmul.mubr.msk.f32.vlgmr.msra.gmra.mxu1 %vm248_vm0, %v244_v9  ;;  %s1051_s8 = scalar_lea.vmem %s1050_s7, 1024  ;;  %p1052_p1 = scmp.lt.s32.totalorder %s1314_s14, %s1050_s7 }
  0x33   : > { %331 = vmatprep.mubr.f32.mxu0 %v1130_v0  ;;  %420 = vmatprep.mubr.f32.mxu1 %v1130_v0  ;;  %p1047_p12 = pnand %p1046_p8, %p1208_p9  ;;  %p1053_p3 = scmp.lt.s32.totalorder %s1051_s8, %s1045_s18 }
  0x35   : > { %p1048_p0 = pneg %p1047_p12  ;;  %p1054_p5 = por %p1053_p3, %p1052_p1 }
  0x36   : > { %928 = vmatmul.mubr.msk.f32.gmra.mxu0 %vm248_vm0, %v245_v10  ;;  %932 = vmatmul.mubr.msk.f32.gmra.mxu1 %vm248_vm0, %v245_v10 }
  0x37   : > { %337 = vmatprep.mubr.f32.mxu0 %v1130_v0  ;;  %426 = vmatprep.mubr.f32.mxu1 %v1130_v0  ;;  %p1055_p6 = pnand %p1054_p5, %p1048_p0 }
  0x3a   : > { %929 = vmatmul.mubr.msk.f32.gmra.mxu0 %vm248_vm0, %v246_v11  ;;  %933 = vmatmul.mubr.msk.f32.gmra.mxu1 %vm248_vm0, %v246_v11 }
  0x3b   : > { %343 = vmatprep.mubr.f32.mxu0 %v1130_v0  ;;  %432 = vmatprep.mubr.f32.mxu1 %v1130_v0 }
  0x3e   : > { %930 = vmatmul.mubr.msk.f32.gmra.mxu0 %vm248_vm0, %v247_v12  ;;  %934 = vmatmul.mubr.msk.f32.gmra.mxu1 %vm248_vm0, %v247_v12 }
  0x3f   : > { %536 = vmatprep.mubr.f32.mxu0 %v1130_v0  ;;  %625 = vmatprep.mubr.f32.mxu1 %v1130_v0 }
  0xf2   : > { %v327_v13 = vpop.f32.mrf.mxu0  ;;  %v416_v14 = vpop.f32.mrf.mxu1 }
  0xf3   : > { %v439_v43 = vmax.f32 %v327_v13, 0.0  ;;  %v441_v44 = vmax.f32 %v416_v14, 0.0 }
  0xf4   : > { %v329_v15 = vpop.f32.mrf.mxu0  ;;  %v418_v16 = vpop.f32.mrf.mxu1 }
  0xf5   : > { %v440_v41 = vmax.f32 %v329_v15, 0.0  ;;  %v442_v42 = vmax.f32 %v418_v16, 0.0 }
  0xf6   : > { %v333_v17 = vpop.f32.mrf.mxu0  ;;  %v422_v18 = vpop.f32.mrf.mxu1 }
  0xf7   : > { %v443_v39 = vmax.f32 %v333_v17, 0.0  ;;  %v445_v40 = vmax.f32 %v422_v18, 0.0  ;;  %v666_v17 = vld [vmem:[%s1368_s3] sm:$0xff] }
  0xf8   : > { %v335_v19 = vpop.f32.mrf.mxu0  ;;  %v424_v20 = vpop.f32.mrf.mxu1 }
  0xf9   : > { %v444_v37 = vmax.f32 %v335_v19, 0.0  ;;  %v446_v38 = vmax.f32 %v424_v20, 0.0 }
  0xfa   : > { %v339_v21 = vpop.f32.mrf.mxu0  ;;  %v428_v22 = vpop.f32.mrf.mxu1 }
  0xfb   : > { %v447_v35 = vmax.f32 %v339_v21, 0.0  ;;  %v449_v36 = vmax.f32 %v428_v22, 0.0 }
  0xfc   : > { %v341_v23 = vpop.f32.mrf.mxu0  ;;  %v430_v24 = vpop.f32.mrf.mxu1 }
  0xfd   : > { %v448_v33 = vmax.f32 %v341_v23, 0.0  ;;  %v450_v34 = vmax.f32 %v430_v24, 0.0 }
  0xfe   : > { %v345_v25 = vpop.f32.mrf.mxu0  ;;  %v434_v26 = vpop.f32.mrf.mxu1 }
  0xff   : > { %v451_v31 = vmax.f32 %v345_v25, 0.0  ;;  %v453_v32 = vmax.f32 %v434_v26, 0.0 }
 0x100   : > { %v347_v27 = vpop.f32.mrf.mxu0  ;;  %v436_v28 = vpop.f32.mrf.mxu1 }
 0x101   : > { %v452_v29 = vmax.f32 %v347_v27, 0.0  ;;  %v454_v30 = vmax.f32 %v436_v28, 0.0 }
 0x103   : > { %496 = vmatprep.subr.mxu0 %v452_v29  ;;  %585 = vmatprep.subr.mxu1 %v454_v30 }
 0x104   : > { %497 = vmatpush1.msra.mxu0 %v451_v31  ;;  %586 = vmatpush1.msra.mxu1 %v453_v32 }
 0x105   : > { %498 = vmatprep.subr.mxu0 %v448_v33  ;;  %587 = vmatprep.subr.mxu1 %v450_v34 }
 0x106   : > { %499 = vmatpush1.msra.mxu0 %v447_v35  ;;  %588 = vmatpush1.msra.mxu1 %v449_v36 }
 0x107   : > { %500 = vmatprep.subr.mxu0 %v444_v37  ;;  %589 = vmatprep.subr.mxu1 %v446_v38 }
 0x108   : > { %501 = vmatpush1.msra.mxu0 %v443_v39  ;;  %590 = vmatpush1.msra.mxu1 %v445_v40 }
 0x109   : > { %502 = vmatprep.subr.mxu0 %v440_v41  ;;  %591 = vmatprep.subr.mxu1 %v442_v42 }
 0x10a   : > { %503 = vmatpush1.msra.mxu0 %v439_v43  ;;  %592 = vmatpush1.msra.mxu1 %v441_v44 }
 0x10b   : > { %935 = vmatmul.mubr.msk.f32.vlgmr.msra.gmra.mxu0 %vm459_vm1, %v455_v45  ;;  %939 = vmatmul.mubr.msk.f32.vlgmr.msra.gmra.mxu1 %vm459_vm1, %v455_v45 }
 0x10c   : > { %542 = vmatprep.mubr.f32.mxu0 %v1130_v0  ;;  %631 = vmatprep.mubr.f32.mxu1 %v1130_v0 }
 0x10f   : > { %936 = vmatmul.mubr.msk.f32.gmra.mxu0 %vm459_vm1, %v456_v46  ;;  %940 = vmatmul.mubr.msk.f32.gmra.mxu1 %vm459_vm1, %v456_v46 }
 0x110   : > { %548 = vmatprep.mubr.f32.mxu0 %v1130_v0  ;;  %637 = vmatprep.mubr.f32.mxu1 %v1130_v0 }
 0x113   : > { %937 = vmatmul.mubr.msk.f32.gmra.mxu0 %vm459_vm1, %v457_v47  ;;  %941 = vmatmul.mubr.msk.f32.gmra.mxu1 %vm459_vm1, %v457_v47 }
 0x114   : > { %554 = vmatprep.mubr.f32.mxu0 %v1130_v0  ;;  %643 = vmatprep.mubr.f32.mxu1 %v1130_v0 }
 0x117   : > { %938 = vmatmul.mubr.msk.f32.gmra.mxu0 %vm459_vm1, %v458_v48  ;;  %942 = vmatmul.mubr.msk.f32.gmra.mxu1 %vm459_vm1, %v458_v48 }
 0x118   : > { %734 = vmatprep.mubr.f32.mxu0 %v1130_v0  ;;  %805 = vmatprep.mubr.f32.mxu1 %v1130_v0 }
 0x1cb   : > { %v538_v49 = vpop.f32.mrf.mxu0  ;;  %v627_v50 = vpop.f32.mrf.mxu1 }
 0x1cc   : > { %v650_v15 = vmax.f32 %v538_v49, 0.0  ;;  %v652_v16 = vmax.f32 %v627_v50, 0.0 }
 0x1cd   : > { %v540_v51 = vpop.f32.mrf.mxu0  ;;  %v629_v52 = vpop.f32.mrf.mxu1 }
 0x1ce   : > { %v651_v13 = vmax.f32 %v540_v51, 0.0  ;;  %v653_v14 = vmax.f32 %v629_v52, 0.0 }
 0x1cf   : > { %v544_v53 = vpop.f32.mrf.mxu0  ;;  %v633_v54 = vpop.f32.mrf.mxu1 }
 0x1d0   : > { %v654_v11 = vmax.f32 %v544_v53, 0.0  ;;  %v656_v12 = vmax.f32 %v633_v54, 0.0 }
 0x1d1   : > { %v546_v55 = vpop.f32.mrf.mxu0  ;;  %v635_v56 = vpop.f32.mrf.mxu1 }
 0x1d2   : > { %v655_v9 = vmax.f32 %v546_v55, 0.0  ;;  %v657_v10 = vmax.f32 %v635_v56, 0.0 }
 0x1d3   : > { %v550_v57 = vpop.f32.mrf.mxu0  ;;  %v639_v58 = vpop.f32.mrf.mxu1 }
 0x1d4   : > { %v658_v7 = vmax.f32 %v550_v57, 0.0  ;;  %v660_v8 = vmax.f32 %v639_v58, 0.0 }
 0x1d5   : > { %v552_v59 = vpop.f32.mrf.mxu0  ;;  %v641_v60 = vpop.f32.mrf.mxu1 }
 0x1d6   : > { %v659_v5 = vmax.f32 %v552_v59, 0.0  ;;  %v661_v6 = vmax.f32 %v641_v60, 0.0 }
 0x1d7   : > { %v556_v61 = vpop.f32.mrf.mxu0  ;;  %v645_v62 = vpop.f32.mrf.mxu1 }
 0x1d8   : > { %v662_v4 = vmax.f32 %v556_v61, 0.0  ;;  %v664_v0 = vmax.f32 %v645_v62, 0.0 }
 0x1d9   : > { %v558_v63 = vpop.f32.mrf.mxu0  ;;  %v647_v1 = vpop.f32.mrf.mxu1 }
 0x1da   : > { %v663_v2 = vmax.f32 %v558_v63, 0.0  ;;  %v665_v3 = vmax.f32 %v647_v1, 0.0 }
 0x1dc   : > { %694 = vmatprep.subr.mxu0 %v663_v2  ;;  %765 = vmatprep.subr.mxu1 %v665_v3 }
 0x1dd   : > { %695 = vmatpush1.msra.mxu0 %v662_v4  ;;  %766 = vmatpush1.msra.mxu1 %v664_v0 }
 0x1de   : > { %696 = vmatprep.subr.mxu0 %v659_v5  ;;  %767 = vmatprep.subr.mxu1 %v661_v6 }
 0x1df   : > { %697 = vmatpush1.msra.mxu0 %v658_v7  ;;  %768 = vmatpush1.msra.mxu1 %v660_v8 }
 0x1e0   : > { %698 = vmatprep.subr.mxu0 %v655_v9  ;;  %769 = vmatprep.subr.mxu1 %v657_v10 }
 0x1e1   : > { %699 = vmatpush1.msra.mxu0 %v654_v11  ;;  %770 = vmatpush1.msra.mxu1 %v656_v12 }
 0x1e2   : > { %700 = vmatprep.subr.mxu0 %v651_v13  ;;  %771 = vmatprep.subr.mxu1 %v653_v14 }
 0x1e3   : > { %701 = vmatpush1.msra.mxu0 %v650_v15  ;;  %772 = vmatpush1.msra.mxu1 %v652_v16 }
 0x1e4   : > { %943 = vmatmul.mubr.msk.f32.vlgmr.msra.gmra.mxu0 %vm459_vm1, %v666_v17  ;;  %944 = vmatmul.mubr.msk.f32.vlgmr.msra.gmra.mxu1 %vm459_vm1, %v666_v17 }
 0x2a4   : > { %v736_v18 = vpop.f32.mrf.mxu0  ;;  %v807_v19 = vpop.f32.mrf.mxu1 }
 0x2a5   : > { %812 = vst [vmem:[%s233_s13] sm:$0xff] %v736_v18  ;;  %814 = vst [vmem:[%s233_s13 + $0x10] sm:$0xff] %v807_v19 }
 0x2a6   : > { %v738_v20 = vpop.f32.mrf.mxu0  ;;  %v809_v21 = vpop.f32.mrf.mxu1 }
 0x2a7   : > { %813 = vst [vmem:[%s233_s13 + $0x8] sm:$0xff] %v738_v20  ;;  %815 = vst [vmem:[%s233_s13 + $0x18] sm:$0xff] %v809_v21 }
 0x2a8   : > { %1058 = shalt.err (!%p1055_p6)
}
 0x2a9   : > { %s1059_s9 = scalar_lea.hbm %s1319_s26, 512  ;;  %s1063_s27 = scalar_lea.hbm %s1369_s4, 1024 }
 0x2aa   : > { %p1060_p7 = scmp.ne.s32.totalorder %s1319_s26, %s1059_s9  ;;  %p1064_p13 = scmp.lt.s32.totalorder %s1319_s26, %s1369_s4 }
 0x2ab   : > { %p1065_p2 = scmp.lt.s32.totalorder %s1063_s27, %s1059_s9 }
 0x2ac   : > { %p1061_p10 = pnand %p1060_p7, %p1208_p9 }
 0x2ad   : > { %p1066_p8 = por %p1065_p2, %p1064_p13 }
 0x2ae   : > { %p1062_p4 = pneg %p1061_p10 }
 0x2b0   : > { %p1067_p12 = pnand %p1066_p8, %p1062_p4 }
 0x2b2   : > { %1070 = shalt.err (!%p1067_p12)
}
 0x2b3   : > { %954 = dma.vmem_to_hbm [thread:$0]  (%p1208_p9), %s1314_s14, 512, %s1319_s26, %s817_s25  }
 0x2b4 PF: > { %s845_s13 = sand.u32 1, %s1105_s15   ;;  %p1375_p0 = scmp.ge.s32.totalorder %s1125_s20, 2 }
 0x2b5   : > { %s846_s21 = scalar_lea.sflag [#allocation4], %s845_s13 }
 0x2b6   : > { %p961_p1 = pnand %p1375_p0, %p1215_p11 }
 0x2b8   : > { %p962_p3 = pneg %p961_p1 }
 0x2ba   : > { %1100 = dma.done.wait (%p962_p3), %s846_s21, 512  }
 0x2bb   : > { %1102 = vsyncadd (%p962_p3), %s846_s21, 4294966784  ;;  %s20_s20 = sadd.s32 1, %s1125_s20   ;;  %s1376_s15 = smov %s1109_s16 }
 0x2bc   : > { %p17_p5 = scmp.ge.s32.totalorder %s20_s20, 4   ;;  %s1377_s16 = smov %s1113_s17 }
 0x2bd   : > { %s1378_s17 = smov %s1213_s29  ;;  %s1379_s18 = smov %s1121_s19 }
 0x2be   : > { %s1380_s19 = smov %s1382_s23  ;;  %19 = sbr.rel (!%p17_p5) target bundleno = 6 (0x6), region = 81 }
 0x2c3   :  { %851 = vsyncpa [#allocation3], 1 }
 0x2c4   :  { %853 = vsyncpa [#allocation3 + $0x1], 1 }
 0x2c5   :  { %854 = vsyncpa [#allocation4], 1 }
 0x2c6   :  { %856 = vsyncpa [#allocation4 + $0x1], 1 }

</bundles_post_ra>
